<compile_context>
chip_gen: v6e
topology: v6e:2x2x1
jax: 0.10.0
libtpu: 0.0.40
codegen_flags: <defaults>
</compile_context>

<pallas_src>
import jax
import jax.numpy as jnp
from jax.experimental import pallas as pl
from jax.experimental.pallas import tpu as pltpu

LANE = 128


def _round_up(x, m):
    return (x + m - 1) // m * m


# ----------------------------- kernels --------------------------------------


def _sage1_kernel(a_ref, xb_ref, xr_ref, w1_ref, b1_ref, h1_ref):
    # a_ref : [TM, Np]   bf16  row tile of row-normalized mean-agg matrix
    # xb_ref: [Np, Cp]   bf16  full node features (resident across grid steps)
    # xr_ref: [TM, Cp]   f32   this tile's own rows of x (SAGE root term)
    # w1_ref: [2*Cp, Hp] f32   stacked [Wl1; Wr1]   b1_ref: [1, Hp] f32
    agg = jnp.dot(a_ref[...], xb_ref[...], preferred_element_type=jnp.float32)
    cat = jnp.concatenate([agg, xr_ref[...]], axis=1)          # [TM, 2*Cp]
    h1 = jnp.dot(cat, w1_ref[...], preferred_element_type=jnp.float32) + b1_ref[...]
    h1_ref[...] = jnp.maximum(h1, 0.0)


def _sage2_fc_kernel(a_ref, hb_ref, hr_ref, w2_ref, b2_ref, wfc_ref, bfc_ref,
                     out_ref):
    # a_ref : [TM, Np]   bf16    hb_ref: [Np, Hp] bf16 (full h1, resident)
    # hr_ref: [TM, Hp]   f32     w2_ref: [2*Hp, Hp]  wfc_ref: [Hp, NHp]
    agg = jnp.dot(a_ref[...], hb_ref[...], preferred_element_type=jnp.float32)
    cat = jnp.concatenate([agg, hr_ref[...]], axis=1)          # [TM, 2*Hp]
    h2 = jnp.dot(cat, w2_ref[...], preferred_element_type=jnp.float32) + b2_ref[...]
    h2 = jnp.maximum(h2, 0.0)
    out = jnp.dot(h2, wfc_ref[...], preferred_element_type=jnp.float32) + bfc_ref[...]
    out_ref[...] = out.astype(out_ref.dtype)


# --------------------------- wrapper / glue ----------------------------------


def choose_tiling(n):
    """Row-tile size and padded node count. Larger TM amortizes grid-step
    overhead (good for v6e's 128 MiB VMEM); 128/256 also fits v7x's 64 MiB."""
    n_pad = _round_up(max(n, 8), LANE)
    tm = 256 if (n_pad >= 256 and n_pad % 256 == 0) else 128
    return tm, n_pad


def build_mean_agg_matrix(edge_index, n, n_pad):
    """Dense row-normalized mean-aggregation matrix, built ONCE per graph.
    A[i, j] = 1/deg(i) for edge j->i (PyG SAGEConv 'mean'); isolated nodes -> 0.
    Stored in bf16: it is the only O(N^2) operand (halves DMA bytes, 2x MXU)."""
    # TODO(synk): for large graphs replace dense A with CSR row offsets +
    # scalar-prefetched neighbor gather (PrefetchScalarGridSpec) to avoid O(N^2).
    src = edge_index[0]
    dst = edge_index[1]
    adj = jnp.zeros((n_pad, n_pad), jnp.float32).at[dst, src].add(1.0)
    deg = adj.sum(axis=1, keepdims=True)
    a = adj / jnp.maximum(deg, 1.0)
    return a.astype(jnp.bfloat16)


def prepare_params(params, in_channels, hidden_channels, num_households):
    """Pad weights to 128-lane multiples and stack [Wl; Wr] once (not per call)."""
    cp = _round_up(in_channels, LANE)
    hp = _round_up(hidden_channels, LANE)
    nhp = _round_up(num_households, LANE)

    def pad2(w, r, c):
        return jnp.zeros((r, c), jnp.float32).at[:w.shape[0], :w.shape[1]].set(w)

    return {
        "w1": jnp.concatenate(
            [pad2(params["wl1"], cp, hp), pad2(params["wr1"], cp, hp)], axis=0),
        "b1": pad2(params["b1"], 1, hp),
        "w2": jnp.concatenate(
            [pad2(params["wl2"], hp, hp), pad2(params["wr2"], hp, hp)], axis=0),
        "b2": pad2(params["b2"], 1, hp),
        "wfc": pad2(params["wfc"], hp, nhp),
        "bfc": pad2(params["bfc"], 1, nhp),
        "dims": (cp, hp, nhp),
    }


def household_assignment_gnn(x, a_bf16, prepared, num_households):
    """x: [N, in_channels] f32, a_bf16: [N_pad, N_pad] bf16 (from
    build_mean_agg_matrix), prepared: output of prepare_params."""
    n, in_channels = x.shape
    n_pad = a_bf16.shape[0]
    cp, hp, nhp = prepared["dims"]
    tm, n_pad_check = choose_tiling(n)
    assert n_pad == n_pad_check
    grid = (n_pad // tm,)

    # zero-padded node features: bf16 copy for the aggregation matmul,
    # f32 copy (row-tiled) for the root term / elementwise path
    xf = jnp.zeros((n_pad, cp), jnp.float32).at[:n, :in_channels].set(x)
    xb = xf.astype(jnp.bfloat16)

    cparams = pltpu.CompilerParams(
        dimension_semantics=("parallel",),
        vmem_limit_bytes=48 * 1024 * 1024,
    )

    cost1 = pl.CostEstimate(
        flops=int(2 * n_pad * n_pad * cp + 2 * n_pad * (2 * cp) * hp),
        transcendentals=0,
        bytes_accessed=int(a_bf16.size * 2 + xb.size * 2 + xf.size * 4
                           + prepared["w1"].size * 4 + n_pad * hp * 4),
    )
    h1 = pl.pallas_call(
        _sage1_kernel,
        out_shape=jax.ShapeDtypeStruct((n_pad, hp), jnp.float32),
        grid=grid,
        in_specs=[
            pl.BlockSpec((tm, n_pad), lambda i: (i, 0)),    # A row tile
            pl.BlockSpec((n_pad, cp), lambda i: (0, 0)),    # x (bf16, resident)
            pl.BlockSpec((tm, cp), lambda i: (i, 0)),       # x root tile (f32)
            pl.BlockSpec((2 * cp, hp), lambda i: (0, 0)),   # [Wl1; Wr1]
            pl.BlockSpec((1, hp), lambda i: (0, 0)),        # b1
        ],
        out_specs=pl.BlockSpec((tm, hp), lambda i: (i, 0)),
        compiler_params=cparams,
        cost_estimate=cost1,
    )(a_bf16, xb, xf, prepared["w1"], prepared["b1"])

    h1_bf16 = h1.astype(jnp.bfloat16)   # aggregation operand only; epilogue stays f32

    cost2 = pl.CostEstimate(
        flops=int(2 * n_pad * n_pad * hp + 2 * n_pad * (2 * hp) * hp
                  + 2 * n_pad * hp * nhp),
        transcendentals=0,
        bytes_accessed=int(a_bf16.size * 2 + h1_bf16.size * 2 + h1.size * 4
                           + prepared["w2"].size * 4 + prepared["wfc"].size * 4
                           + n_pad * nhp * 4),
    )
    out_pad = pl.pallas_call(
        _sage2_fc_kernel,
        out_shape=jax.ShapeDtypeStruct((n_pad, nhp), jnp.float32),
        grid=grid,
        in_specs=[
            pl.BlockSpec((tm, n_pad), lambda i: (i, 0)),    # A row tile
            pl.BlockSpec((n_pad, hp), lambda i: (0, 0)),    # h1 (bf16, resident)
            pl.BlockSpec((tm, hp), lambda i: (i, 0)),       # h1 root tile (f32)
            pl.BlockSpec((2 * hp, hp), lambda i: (0, 0)),   # [Wl2; Wr2]
            pl.BlockSpec((1, hp), lambda i: (0, 0)),        # b2
            pl.BlockSpec((hp, nhp), lambda i: (0, 0)),      # Wfc
            pl.BlockSpec((1, nhp), lambda i: (0, 0)),       # bfc
        ],
        out_specs=pl.BlockSpec((tm, nhp), lambda i: (i, 0)),
        compiler_params=cparams,
        cost_estimate=cost2,
    )(a_bf16, h1_bf16, h1, prepared["w2"], prepared["b2"],
      prepared["wfc"], prepared["bfc"])

    return out_pad[:n, :num_households]


def init_params(key, in_channels, hidden_channels, num_households):
    ks = jax.random.split(key, 6)
    scale = 0.1
    # weights stored pre-transposed as [in, out]; biases as [1, out] for broadcast
    return {
        "wl1": scale * jax.random.normal(ks[0], (in_channels, hidden_channels), jnp.float32),
        "wr1": scale * jax.random.normal(ks[1], (in_channels, hidden_channels), jnp.float32),
        "b1": jnp.zeros((1, hidden_channels), jnp.float32),
        "wl2": scale * jax.random.normal(ks[2], (hidden_channels, hidden_channels), jnp.float32),
        "wr2": scale * jax.random.normal(ks[3], (hidden_channels, hidden_channels), jnp.float32),
        "b2": jnp.zeros((1, hidden_channels), jnp.float32),
        "wfc": scale * jax.random.normal(ks[4], (hidden_channels, num_households), jnp.float32),
        "bfc": scale * jax.random.normal(ks[5], (1, num_households), jnp.float32),
    }


if __name__ == "__main__":
    key = jax.random.PRNGKey(0)
    k_feat, k_src, k_dst, k_par = jax.random.split(key, 4)

    N = 64              # person nodes
    IN_CHANNELS = 16    # person feature dim
    HIDDEN = 32         # hidden_channels
    NUM_HH = 24         # num_households (fc output dim)
    E = 128             # edges

    x = jax.random.normal(k_feat, (N, IN_CHANNELS), dtype=jnp.float32)
    edge_index = jnp.stack([
        jax.random.randint(k_src, (E,), 0, N, dtype=jnp.int32),
        jax.random.randint(k_dst, (E,), 0, N, dtype=jnp.int32),
    ], axis=0)

    params = init_params(k_par, IN_CHANNELS, HIDDEN, NUM_HH)

    # graph-/param-dependent prep done once (hoisted out of the per-forward path)
    _, n_pad = choose_tiling(N)
    a_bf16 = build_mean_agg_matrix(edge_index, N, n_pad)
    prepared = prepare_params(params, IN_CHANNELS, HIDDEN, NUM_HH)

    out = household_assignment_gnn(x, a_bf16, prepared, NUM_HH)
    jax.block_until_ready(out)
    assert out.shape == (N, NUM_HH)
    print("KERNEL_OK")
</pallas_src>

<mosaic_0001>
module attributes {stable_mosaic.version = 11 : i64} {
  func.func @_sage1_kernel(%arg0: i32, %arg1: memref<128x128xbf16, #tpu.memory_space<vmem>>, %arg2: memref<128x128xbf16, #tpu.memory_space<vmem>>, %arg3: memref<128x128xf32, #tpu.memory_space<vmem>>, %arg4: memref<256x128xf32, #tpu.memory_space<vmem>>, %arg5: memref<1x128xf32, #tpu.memory_space<vmem>>, %arg6: memref<128x128xf32, #tpu.memory_space<vmem>>) attributes {dimension_semantics = [#tpu.dimension_semantics<parallel>], iteration_bounds = array<i64: 1>, scalar_prefetch = 0 : i64, scratch_operands = 0 : i64, tpu.core_type = #tpu.core_type<tc>, window_params = [{transform_indices = @transform_0, window_bounds = array<i64: 128, 128>}, {pipeline_mode = #tpu.pipeline_mode<synchronous>, transform_indices = @transform_1, window_bounds = array<i64: 128, 128>}, {transform_indices = @transform_2, window_bounds = array<i64: 128, 128>}, {pipeline_mode = #tpu.pipeline_mode<synchronous>, transform_indices = @transform_3, window_bounds = array<i64: 256, 128>}, {pipeline_mode = #tpu.pipeline_mode<synchronous>, transform_indices = @transform_4, window_bounds = array<i64: 1, 128>}, {transform_indices = @transform_5, window_bounds = array<i64: 128, 128>}]} {
    %c0 = arith.constant 0 : index
    %c0_0 = arith.constant 0 : index
    %0 = vector.load %arg1[%c0, %c0_0] : memref<128x128xbf16, #tpu.memory_space<vmem>>, vector<128x128xbf16>
    %c0_1 = arith.constant 0 : index
    %c0_2 = arith.constant 0 : index
    %1 = vector.load %arg2[%c0_1, %c0_2] : memref<128x128xbf16, #tpu.memory_space<vmem>>, vector<128x128xbf16>
    %cst = arith.constant dense<0.000000e+00> : vector<128x128xf32>
    %2 = tpu.matmul %0, %1, %cst {dimension_numbers = #tpu.dot_dimension_numbers<[1], [0], [0], [1], [0, 0, 1, 1], [], []>} : vector<128x128xbf16>, vector<128x128xbf16>, vector<128x128xf32> -> vector<128x128xf32>
    %c0_3 = arith.constant 0 : index
    %c0_4 = arith.constant 0 : index
    %3 = vector.load %arg3[%c0_3, %c0_4] : memref<128x128xf32, #tpu.memory_space<vmem>>, vector<128x128xf32>
    %4 = tpu.concatenate %2, %3 in 1 : vector<128x128xf32>, vector<128x128xf32> -> vector<128x256xf32>
    %c0_5 = arith.constant 0 : index
    %c0_6 = arith.constant 0 : index
    %5 = vector.load %arg4[%c0_5, %c0_6] : memref<256x128xf32, #tpu.memory_space<vmem>>, vector<256x128xf32>
    %cst_7 = arith.constant dense<0.000000e+00> : vector<128x128xf32>
    %6 = tpu.matmul %4, %5, %cst_7 {dimension_numbers = #tpu.dot_dimension_numbers<[1], [0], [0], [1], [0, 0, 1, 1], [], []>} : vector<128x256xf32>, vector<256x128xf32>, vector<128x128xf32> -> vector<128x128xf32>
    %c0_8 = arith.constant 0 : index
    %c0_9 = arith.constant 0 : index
    %7 = vector.load %arg5[%c0_8, %c0_9] : memref<1x128xf32, #tpu.memory_space<vmem>>, vector<1x128xf32>
    %8 = vector.broadcast %7 : vector<1x128xf32> to vector<128x128xf32>
    %9 = arith.addf %6, %8 : vector<128x128xf32>
    %cst_10 = arith.constant 0.000000e+00 : f32
    %10 = vector.broadcast %cst_10 : f32 to vector<128x128xf32>
    %11 = arith.maximumf %9, %10 : vector<128x128xf32>
    %c0_11 = arith.constant 0 : index
    %c0_12 = arith.constant 0 : index
    %12 = vector.load %arg6[%c0_11, %c0_12] : memref<128x128xf32, #tpu.memory_space<vmem>>, vector<128x128xf32>
    tpu.vector_store %arg6[%c0_11, %c0_12], %11 {strides = array<i32>} : memref<128x128xf32, #tpu.memory_space<vmem>>, vector<128x128xf32>,
    return
  }
  func.func @transform_0(%arg0: i32) -> (i32, i32) {
    %c0_i32 = arith.constant 0 : i32
    %c0_i32_0 = arith.constant 0 : i32
    return %arg0, %c0_i32 : i32, i32
  }
  func.func @transform_1(%arg0: i32) -> (i32, i32) {
    %c0_i32 = arith.constant 0 : i32
    %c0_i32_0 = arith.constant 0 : i32
    %c0_i32_1 = arith.constant 0 : i32
    return %c0_i32, %c0_i32_0 : i32, i32
  }
  func.func @transform_2(%arg0: i32) -> (i32, i32) {
    %c0_i32 = arith.constant 0 : i32
    %c0_i32_0 = arith.constant 0 : i32
    return %arg0, %c0_i32 : i32, i32
  }
  func.func @transform_3(%arg0: i32) -> (i32, i32) {
    %c0_i32 = arith.constant 0 : i32
    %c0_i32_0 = arith.constant 0 : i32
    %c0_i32_1 = arith.constant 0 : i32
    return %c0_i32, %c0_i32_0 : i32, i32
  }
  func.func @transform_4(%arg0: i32) -> (i32, i32) {
    %c0_i32 = arith.constant 0 : i32
    %c0_i32_0 = arith.constant 0 : i32
    %c0_i32_1 = arith.constant 0 : i32
    return %c0_i32, %c0_i32_0 : i32, i32
  }
  func.func @transform_5(%arg0: i32) -> (i32, i32) {
    %c0_i32 = arith.constant 0 : i32
    %c0_i32_0 = arith.constant 0 : i32
    return %arg0, %c0_i32 : i32, i32
  }
}

</mosaic_0001>

<bundles_post_ra>
// kernel: tpu_custom_call.1
= control target key start
LH: loop header
LB: loop body
LE: loop exit
PB: predicated region body
PF: predicated region fallthrough
CT: control target
= control target key end

     0   :  { %10 = vsyncpa [#allocation3], 0  ;;  %s947_s0 = inlined_call_operand.hbm [shape: bf16[128,128], index: 0, kind: input, shape index: {}]   ;;  %s948_s1 = inlined_call_operand.hbm [shape: bf16[128,128], index: 1, kind: input, shape index: {}]   ;;  %s949_s2 = inlined_call_operand.hbm [shape: f32[128,128], index: 2, kind: input, shape index: {}]   ;;  %s950_s3 = inlined_call_operand.hbm [shape: f32[256,128], index: 3, kind: input, shape index: {}]   ;;  %s951_s4 = inlined_call_operand.vmem [shape: f32[1,128], index: 4, kind: input, shape index: {}]   ;;  %s952_s5 = inlined_call_operand.hbm [shape: f32[128,128], index: 5, kind: output, shape index: {}]  }
   0x1   :  { %11 = vsyncpa [#allocation6], 0 }
   0x2   :  { %12 = vsyncpa [#allocation9], 0 }
   0x3   :  { %13 = vsyncpa [#allocation4], 0  ;;  %s863_s18 = smov [#allocation5]   ;;  %s864_s20 = smov [#allocation2]  }
   0x4   :  { %s31_s19 = sshll.u32 %s863_s18, 4  ;;  %s19_s21 = sshll.u32 %s864_s20, 4  ;;  %s32_s19 = int_to_ptr.vmem [resolvable:$true] %s31_s19  ;;  %s20_s21 = int_to_ptr.vmem [resolvable:$true] %s19_s21 }
   0x5   :  { %s763_s22 = scalar_lea.vmem %s32_s19, 1024  ;;  %p768_p1 = scmp.lt.s32.totalorder %s32_s19, %s32_s19 }
   0x6   :  { %p764_p0 = scmp.ne.s32.totalorder %s32_s19, %s763_s22  ;;  %p769_p2 = scmp.lt.s32.totalorder %s763_s22, %s763_s22 }
   0x8   :  { %p770_p3 = por %p769_p2, %p768_p1 }
   0xa   :  { %p771_p4 = pnand %p770_p3, %p764_p0 }
   0xc   :  { %774 = shalt.err (!%p771_p4)
}
   0xd   :  { %s865_s23 = smov 64   ;;  %s866_s24 = smov 4  }
   0xe   :  { %37 = dma.hbm_to_vmem [thread:$0]  %s948_s1, 1024, %s32_s19, [#allocation6], %s865_s23, %s865_s23, %s866_s24  }
   0xf   :  { %s783_s27 = scalar_lea.vmem %s20_s21, 1024  ;;  %p788_p6 = scmp.lt.s32.totalorder %s20_s21, %s20_s21 }
  0x10   :  { %p784_p5 = scmp.ne.s32.totalorder %s20_s21, %s783_s27  ;;  %p789_p7 = scmp.lt.s32.totalorder %s783_s27, %s783_s27 }
  0x12   :  { %p790_p8 = por %p789_p7, %p788_p6 }
  0x14   :  { %p791_p9 = pnand %p790_p8, %p784_p5 }
  0x16   :  { %794 = shalt.err (!%p791_p9)
}
  0x17   :  { %25 = dma.hbm_to_vmem [thread:$0]  %s947_s0, 1024, %s20_s21, [#allocation3], %s865_s23, %s865_s23, %s866_s24  }
  0x18   :  { %s867_s30 = smov [#allocation7]  }
  0x19   :  { %s43_s6 = sshll.u32 %s867_s30, 4  ;;  %s44_s6 = int_to_ptr.vmem [resolvable:$true] %s43_s6 }
  0x1a   :  { %s803_s7 = scalar_lea.vmem %s44_s6, 2048  ;;  %p808_p11 = scmp.lt.s32.totalorder %s44_s6, %s44_s6 }
  0x1b   :  { %p804_p10 = scmp.ne.s32.totalorder %s44_s6, %s803_s7  ;;  %p809_p12 = scmp.lt.s32.totalorder %s803_s7, %s803_s7 }
  0x1d   :  { %p810_p13 = por %p809_p12, %p808_p11 }
  0x1f   :  { %p811_p0 = pnand %p810_p13, %p804_p10 }
  0x21   :  { %814 = shalt.err (!%p811_p0)
}
  0x22   :  { %s868_s1 = smov 128   ;;  %s869_s8 = smov 8  }
  0x23   :  { %49 = dma.hbm_to_vmem [thread:$0]  %s949_s2, 2048, %s44_s6, [#allocation6], %s868_s1, %s868_s1, %s869_s8  }
  0x24   :  { %s870_s0 = smov [#allocation8]  }
  0x25   :  { %s55_s11 = sshll.u32 %s870_s0, 4  ;;  %s56_s11 = int_to_ptr.vmem [resolvable:$true] %s55_s11 }
  0x26   :  { %s823_s12 = scalar_lea.vmem %s56_s11, 4096  ;;  %p828_p2 = scmp.lt.s32.totalorder %s56_s11, %s56_s11 }
  0x27   :  { %p824_p1 = scmp.ne.s32.totalorder %s56_s11, %s823_s12  ;;  %p829_p3 = scmp.lt.s32.totalorder %s823_s12, %s823_s12 }
  0x29   :  { %p830_p4 = por %p829_p3, %p828_p2 }
  0x2b   :  { %p831_p5 = pnand %p830_p4, %p824_p1 }
  0x2d   :  { %834 = shalt.err (!%p831_p5)
}
  0x2e   :  { %61 = dma.hbm_to_vmem [thread:$0]  %s950_s3, 4096, %s56_s11, [#allocation9], %s868_s1, %s868_s1, %s869_s8  }
  0x2f   :  { %855 = dma.done.wait [#allocation3], 1024  }
  0x30   :  { %856 = vsyncadd [#allocation3], 4294966272 }
  0x31   :  { %857 = dma.done.wait [#allocation6], 3072  }
  0x32   :  { %858 = vsyncadd [#allocation6], 4294964224 }
  0x33   :  { %859 = dma.done.wait [#allocation9], 4096  }
  0x34   :  { %860 = vsyncadd [#allocation9], 4294963200  ;;  %v739_v0 = vld [vmem:[#allocation5 + $0x38] sm:$0xff]   ;;  %v740_v1 = vld [vmem:[#allocation5 + $0x30] sm:$0xff]  }
  0x35   :  { %666 = vmatprep.subr.bf16.mxu0 %v739_v0  ;;  %v741_v2 = vld [vmem:[#allocation5 + $0x28] sm:$0xff]   ;;  %v742_v3 = vld [vmem:[#allocation5 + $0x20] sm:$0xff]   ;;  %v743_v5 = vld [vmem:[#allocation5 + $0x18] sm:$0xff]  }
  0x36   :  { %667 = vmatpush3.bf16.msra.mxu0 %v739_v0  ;;  %v747_v4 = vld [vmem:[#allocation2] sm:$0xff]   ;;  %v744_v6 = vld [vmem:[#allocation5 + $0x10] sm:$0xff]   ;;  %v349_v7 = vld [vmem:[#allocation8 + $0xf8] sm:$0xff] }
  0x37   :  { %668 = vmatprep.subr.bf16.mxu0 %v740_v1  ;;  %682 = vmatprep.mubr.bf16.mxu0 %v747_v4  ;;  %v333_v8 = vld [vmem:[#allocation8 + $0x78] sm:$0xff]  ;;  %v348_v9 = vld [vmem:[#allocation8 + $0xf0] sm:$0xff]  ;;  %v745_v11 = vld [vmem:[#allocation5 + $0x8] sm:$0xff]  }
  0x38   :  { %698 = vmatprep.subr.mxu1 %v349_v7  ;;  %v332_v10 = vld [vmem:[#allocation8 + $0x70] sm:$0xff]  ;;  %v347_v12 = vld [vmem:[#allocation8 + $0xe8] sm:$0xff]  ;;  %v346_v14 = vld [vmem:[#allocation8 + $0xe0] sm:$0xff] }
  0x39   :  { %714 = vmatpush3.msra.mxu1 %v333_v8  ;;  %v331_v13 = vld [vmem:[#allocation8 + $0x68] sm:$0xff]  ;;  %v330_v15 = vld [vmem:[#allocation8 + $0x60] sm:$0xff]  ;;  %v345_v17 = vld [vmem:[#allocation8 + $0xd8] sm:$0xff] }
  0x3a   :  { %669 = vmatpush3.bf16.msra.mxu0 %v740_v1  ;;  %699 = vmatprep.subr.mxu1 %v348_v9  ;;  %v746_v16 = vld [vmem:[#allocation5] sm:$0xff]   ;;  %v329_v18 = vld [vmem:[#allocation8 + $0x58] sm:$0xff]  ;;  %v344_v19 = vld [vmem:[#allocation8 + $0xd0] sm:$0xff] }
  0x3b   :  { %670 = vmatprep.subr.bf16.mxu0 %v741_v2  ;;  %715 = vmatpush3.msra.mxu1 %v332_v10  ;;  %v328_v20 = vld [vmem:[#allocation8 + $0x50] sm:$0xff]  ;;  %v343_v21 = vld [vmem:[#allocation8 + $0xc8] sm:$0xff]  ;;  %v342_v24 = vld [vmem:[#allocation8 + $0xc0] sm:$0xff] }
  0x3c   :  { %700 = vmatprep.subr.mxu1 %v347_v12  ;;  %v327_v22 = vld [vmem:[#allocation8 + $0x48] sm:$0xff]  ;;  %v749_v25 = vld [vmem:[#allocation2 + $0x10] sm:$0xff]   ;;  %v326_v26 = vld [vmem:[#allocation8 + $0x40] sm:$0xff] }
  0x3d   :  { %716 = vmatpush3.msra.mxu1 %v331_v13  ;;  %v748_v23 = vld [vmem:[#allocation2 + $0x8] sm:$0xff]   ;;  %v341_v27 = vld [vmem:[#allocation8 + $0xb8] sm:$0xff]  ;;  %v340_v29 = vld [vmem:[#allocation8 + $0xb0] sm:$0xff] }
  0x3e   :  { %671 = vmatpush3.bf16.msra.mxu0 %v741_v2  ;;  %701 = vmatprep.subr.mxu1 %v346_v14  ;;  %v325_v28 = vld [vmem:[#allocation8 + $0x38] sm:$0xff]  ;;  %v324_v30 = vld [vmem:[#allocation8 + $0x30] sm:$0xff]  ;;  %v339_v31 = vld [vmem:[#allocation8 + $0xa8] sm:$0xff] }
  0x3f   :  { %672 = vmatprep.subr.bf16.mxu0 %v742_v3  ;;  %717 = vmatpush3.msra.mxu1 %v330_v15  ;;  %v750_v32 = vld [vmem:[#allocation2 + $0x18] sm:$0xff]   ;;  %v323_v33 = vld [vmem:[#allocation8 + $0x28] sm:$0xff]  ;;  %v751_v34 = vld [vmem:[#allocation2 + $0x20] sm:$0xff]  }
  0x40   :  { %702 = vmatprep.subr.mxu1 %v345_v17  ;;  %v338_v35 = vld [vmem:[#allocation8 + $0xa0] sm:$0xff]  ;;  %v337_v37 = vld [vmem:[#allocation8 + $0x98] sm:$0xff]  ;;  %v336_v39 = vld [vmem:[#allocation8 + $0x90] sm:$0xff] }
  0x41   :  { %718 = vmatpush3.msra.mxu1 %v329_v18  ;;  %v322_v36 = vld [vmem:[#allocation8 + $0x20] sm:$0xff]  ;;  %v321_v38 = vld [vmem:[#allocation8 + $0x18] sm:$0xff]  ;;  %v752_v40 = vld [vmem:[#allocation2 + $0x28] sm:$0xff]  }
  0x42   :  { %673 = vmatpush3.bf16.msra.mxu0 %v742_v3  ;;  %703 = vmatprep.subr.mxu1 %v344_v19  ;;  %v320_v41 = vld [vmem:[#allocation8 + $0x10] sm:$0xff]  ;;  %v335_v43 = vld [vmem:[#allocation8 + $0x88] sm:$0xff]  ;;  %v754_v44 = vld [vmem:[#allocation2 + $0x38] sm:$0xff]  }
  0x43   :  { %674 = vmatprep.subr.bf16.mxu0 %v743_v5  ;;  %719 = vmatpush3.msra.mxu1 %v328_v20  ;;  %v753_v42 = vld [vmem:[#allocation2 + $0x30] sm:$0xff]   ;;  %v319_v45 = vld [vmem:[#allocation8 + $0x8] sm:$0xff]  ;;  %v334_v46 = vld [vmem:[#allocation8 + $0x80] sm:$0xff] }
  0x44   :  { %704 = vmatprep.subr.mxu1 %v343_v21  ;;  %v318_v47 = vld [vmem:[#allocation8] sm:$0xff]  ;;  %v303_v51 = vld [vmem:[#allocation7 + $0x8] sm:$0xff]  ;;  %v304_v54 = vld [vmem:[#allocation7 + $0x10] sm:$0xff] }
  0x45   :  { %720 = vmatpush3.msra.mxu1 %v327_v22  ;;  %v302_v48 = vld [vmem:[#allocation7] sm:$0xff]  ;;  %v305_v57 = vld [vmem:[#allocation7 + $0x18] sm:$0xff]  ;;  %v307_v58 = vld [vmem:[#allocation7 + $0x28] sm:$0xff] }
  0x46   :  { %675 = vmatpush3.bf16.msra.mxu0 %v743_v5  ;;  %705 = vmatprep.subr.mxu1 %v342_v24  ;;  %v306_v49 = vld [vmem:[#allocation7 + $0x20] sm:$0xff]  ;;  %v308_v61 = vld [vmem:[#allocation7 + $0x30] sm:$0xff]  ;;  %v309_v63 = vld [vmem:[#allocation7 + $0x38] sm:$0xff] }
  0x47   :  { %676 = vmatprep.subr.bf16.mxu0 %v744_v6  ;;  %721 = vmatpush3.msra.mxu1 %v326_v26  ;;  %v310_v1 = vld [vmem:[#allocation7 + $0x40] sm:$0xff]  ;;  %v311_v3 = vld [vmem:[#allocation7 + $0x48] sm:$0xff]  ;;  %v312_v5 = vld [vmem:[#allocation7 + $0x50] sm:$0xff] }
  0x48   :  { %706 = vmatprep.subr.mxu1 %v341_v27  ;;  %441 = vmatprep.mubr.f32.mxu1 %v306_v49 }
  0x49   :  { %722 = vmatpush3.msra.mxu1 %v325_v28 }
  0x4a   :  { %677 = vmatpush3.bf16.msra.mxu0 %v744_v6  ;;  %707 = vmatprep.subr.mxu1 %v340_v29 }
  0x4b   :  { %678 = vmatprep.subr.bf16.mxu0 %v745_v11  ;;  %723 = vmatpush3.msra.mxu1 %v324_v30 }
  0x4c   :  { %708 = vmatprep.subr.mxu1 %v339_v31 }
  0x4d   :  { %724 = vmatpush3.msra.mxu1 %v323_v33 }
  0x4e   :  { %679 = vmatpush3.bf16.msra.mxu0 %v745_v11  ;;  %709 = vmatprep.subr.mxu1 %v338_v35  ;;  %v315_v11 = vld [vmem:[#allocation7 + $0x68] sm:$0xff] }
  0x4f   :  { %680 = vmatprep.subr.bf16.mxu0 %v746_v16  ;;  %725 = vmatpush3.msra.mxu1 %v322_v36 }
  0x50   :  { %710 = vmatprep.subr.mxu1 %v337_v37 }
  0x51   :  { %726 = vmatpush3.msra.mxu1 %v321_v38 }
  0x52   :  { %681 = vmatpush3.bf16.msra.mxu0 %v746_v16  ;;  %711 = vmatprep.subr.mxu1 %v336_v39 }
  0x53   :  { %586 = vmatprep.subr.mxu0 %v349_v7  ;;  %727 = vmatpush3.msra.mxu1 %v320_v41  ;;  %v313_v7 = vld [vmem:[#allocation7 + $0x58] sm:$0xff] }
  0x54   :  { %712 = vmatprep.subr.mxu1 %v335_v43 }
  0x55   :  { %683 = vmatmul.mubr.bf16.vlgmr.msra.gmra.mxu0 %v748_v23  ;;  %728 = vmatpush3.msra.mxu1 %v319_v45 }
  0x56   :  { %686 = vmatprep.mubr.bf16.mxu0 %v749_v25  ;;  %587 = vmatpush3.msra.mxu0 %v333_v8 }
  0x57   :  { %588 = vmatprep.subr.mxu0 %v348_v9  ;;  %713 = vmatprep.subr.mxu1 %v334_v46  ;;  %v314_v9 = vld [vmem:[#allocation7 + $0x60] sm:$0xff] }
  0x58   :  { %589 = vmatpush3.msra.mxu0 %v332_v10  ;;  %729 = vmatpush3.msra.mxu1 %v318_v47 }
  0x59   :  { %590 = vmatprep.subr.mxu0 %v347_v12 }
  0x5a   :  { %591 = vmatpush3.msra.mxu0 %v331_v13  ;;  %v316_v13 = vld [vmem:[#allocation7 + $0x70] sm:$0xff] }
  0x5b   :  { %592 = vmatprep.subr.mxu0 %v346_v14 }
  0x5c   :  { %593 = vmatpush3.msra.mxu0 %v330_v15  ;;  %v317_v15 = vld [vmem:[#allocation7 + $0x78] sm:$0xff] }
  0x5d   :  { %687 = vmatmul.mubr.bf16.gmra.mxu0 %v750_v32  ;;  %594 = vmatprep.subr.mxu0 %v345_v17  ;;  %v923_v17 = vld [vmem:[%s951_s4] ss:$0 sm:$0xff]  ;;  %s871_s4 = smov [#allocation10]  }
  0x5e   :  { %690 = vmatprep.mubr.bf16.mxu0 %v751_v34  ;;  %595 = vmatpush3.msra.mxu0 %v329_v18  ;;  %s539_s15 = sshll.u32 %s871_s4, 4  ;;  %s540_s15 = int_to_ptr.vmem [resolvable:$true] %s539_s15 }
  0x5f   :  { %596 = vmatprep.subr.mxu0 %v344_v19  ;;  %s835_s16 = scalar_lea.vmem %s540_s15, 2048  ;;  %p840_p7 = scmp.lt.s32.totalorder %s540_s15, %s540_s15 }
  0x60   :  { %597 = vmatpush3.msra.mxu0 %v328_v20  ;;  %p836_p6 = scmp.ne.s32.totalorder %s540_s15, %s835_s16  ;;  %p841_p8 = scmp.lt.s32.totalorder %s835_s16, %s835_s16 }
  0x61   :  { %598 = vmatprep.subr.mxu0 %v343_v21 }
  0x62   :  { %599 = vmatpush3.msra.mxu0 %v327_v22  ;;  %p842_p9 = por %p841_p8, %p840_p7 }
  0x63   :  { %600 = vmatprep.subr.mxu0 %v342_v24 }
  0x64   :  { %601 = vmatpush3.msra.mxu0 %v326_v26  ;;  %p843_p10 = pnand %p842_p9, %p836_p6 }
  0x65   :  { %691 = vmatmul.mubr.bf16.gmra.mxu0 %v752_v40  ;;  %602 = vmatprep.subr.mxu0 %v341_v27 }
  0x66   :  { %694 = vmatprep.mubr.bf16.mxu0 %v753_v42  ;;  %603 = vmatpush3.msra.mxu0 %v325_v28 }
  0x67   :  { %604 = vmatprep.subr.mxu0 %v340_v29 }
  0x68   :  { %605 = vmatpush3.msra.mxu0 %v324_v30 }
  0x69   :  { %606 = vmatprep.subr.mxu0 %v339_v31 }
  0x6a   :  { %607 = vmatpush3.msra.mxu0 %v323_v33 }
  0x6b   :  { %608 = vmatprep.subr.mxu0 %v338_v35 }
  0x6c   :  { %609 = vmatpush3.msra.mxu0 %v322_v36 }
  0x6d   :  { %695 = vmatmul.mubr.bf16.gmra.mxu0 %v754_v44  ;;  %610 = vmatprep.subr.mxu0 %v337_v37 }
  0x6e   :  { %611 = vmatpush3.msra.mxu0 %v321_v38  ;;  %421 = vmatprep.mubr.f32.mxu0 %v302_v48 }
  0x6f   :  { %612 = vmatprep.subr.mxu0 %v336_v39 }
  0x70   :  { %613 = vmatpush3.msra.mxu0 %v320_v41 }
  0x71   :  { %614 = vmatprep.subr.mxu0 %v335_v43 }
  0x72   :  { %615 = vmatpush3.msra.mxu0 %v319_v45 }
  0x73   :  { %616 = vmatprep.subr.mxu0 %v334_v46 }
  0x74   :  { %617 = vmatpush3.msra.mxu0 %v318_v47 }
 0x115   :  { %v684_v50 = vpop.f32.mrf.mxu0 }
 0x117   :  { %v239_v52 = vpop.f32.mrf.mxu0 }
 0x118   :  { %422 = vmatmul.mubr.f32.vlgmr.msra.gmra.mxu0 %v239_v52 }
 0x119   :  { %v685_v53 = vpop.f32.mrf.mxu0  ;;  %426 = vmatprep.mubr.f32.mxu0 %v303_v51 }
 0x11b   :  { %v242_v55 = vpop.f32.mrf.mxu0 }
 0x11c   :  { %427 = vmatmul.mubr.f32.gmra.mxu0 %v242_v55 }
 0x11d   :  { %v688_v56 = vpop.f32.mrf.mxu0  ;;  %431 = vmatprep.mubr.f32.mxu0 %v304_v54 }
 0x11f   :  { %v255_v59 = vpop.f32.mrf.mxu0 }
 0x120   :  { %432 = vmatmul.mubr.f32.gmra.mxu0 %v684_v50  ;;  %442 = vmatmul.mubr.f32.vlgmr.msra.gmra.mxu1 %v255_v59 }
 0x121   :  { %v689_v60 = vpop.f32.mrf.mxu0  ;;  %436 = vmatprep.mubr.f32.mxu0 %v305_v57  ;;  %446 = vmatprep.mubr.f32.mxu1 %v307_v58 }
 0x123   :  { %v258_v62 = vpop.f32.mrf.mxu0 }
 0x124   :  { %437 = vmatmul.mubr.f32.gmra.mxu0 %v685_v53  ;;  %447 = vmatmul.mubr.f32.gmra.mxu1 %v258_v62 }
 0x125   :  { %451 = vmatprep.mubr.f32.mxu1 %v308_v61  ;;  %v692_v0 = vpop.f32.mrf.mxu0 }
 0x127   :  { %v271_v2 = vpop.f32.mrf.mxu0 }
 0x128   :  { %452 = vmatmul.mubr.f32.gmra.mxu1 %v688_v56 }
 0x129   :  { %456 = vmatprep.mubr.f32.mxu1 %v309_v63  ;;  %v693_v4 = vpop.f32.mrf.mxu0 }
 0x12b   :  { %v274_v6 = vpop.f32.mrf.mxu0 }
 0x12c   :  { %457 = vmatmul.mubr.f32.gmra.mxu1 %v689_v60 }
 0x12d   :  { %461 = vmatprep.mubr.f32.mxu1 %v310_v1  ;;  %v696_v8 = vpop.f32.mrf.mxu0 }
 0x12f   :  { %v287_v10 = vpop.f32.mrf.mxu0 }
 0x130   :  { %462 = vmatmul.mubr.f32.gmra.mxu1 %v271_v2 }
 0x131   :  { %466 = vmatprep.mubr.f32.mxu1 %v311_v3  ;;  %v697_v12 = vpop.f32.mrf.mxu0 }
 0x133   :  { %v290_v14 = vpop.f32.mrf.mxu0 }
 0x134   :  { %467 = vmatmul.mubr.f32.gmra.mxu1 %v274_v6 }
 0x135   :  { %471 = vmatprep.mubr.f32.mxu1 %v312_v5 }
 0x138   :  { %472 = vmatmul.mubr.f32.gmra.mxu1 %v692_v0 }
 0x139   :  { %476 = vmatprep.mubr.f32.mxu1 %v313_v7 }
 0x13c   :  { %477 = vmatmul.mubr.f32.gmra.mxu1 %v693_v4 }
 0x13d   :  { %481 = vmatprep.mubr.f32.mxu1 %v314_v9 }
 0x140   :  { %482 = vmatmul.mubr.f32.gmra.mxu1 %v287_v10 }
 0x141   :  { %486 = vmatprep.mubr.f32.mxu1 %v315_v11 }
 0x144   :  { %487 = vmatmul.mubr.f32.gmra.mxu1 %v290_v14 }
 0x145   :  { %491 = vmatprep.mubr.f32.mxu1 %v316_v13 }
 0x148   :  { %492 = vmatmul.mubr.f32.gmra.mxu1 %v696_v8 }
 0x149   :  { %496 = vmatprep.mubr.f32.mxu1 %v317_v15 }
 0x14c   :  { %497 = vmatmul.mubr.f32.gmra.mxu1 %v697_v12 }
 0x1d8   :  { %v618_v16 = vpop.f32.mrf.mxu0 }
 0x1da   :  { %v619_v18 = vpop.f32.mrf.mxu0 }
 0x1db   :  { %v620_v19 = vadd.f32 %v619_v18, %v618_v16 }
 0x1dc   :  { %v621_v20 = vpop.f32.mrf.mxu0 }
 0x1dd   :  { %v424_v21 = vadd.f32 %v620_v19, %v923_v17 }
 0x1de   :  { %v622_v22 = vpop.f32.mrf.mxu0 }
 0x1df   :  { %v502_v23 = vmax.f32 %v424_v21, 0.0  ;;  %v623_v24 = vadd.f32 %v622_v22, %v621_v20 }
 0x1e0   :  { %v624_v25 = vpop.f32.mrf.mxu0  ;;  %v630_v26 = vpop.f32.mrf.mxu1 }
 0x1e1   :  { %518 = vst [vmem:[#allocation10] sm:$0xff] %v502_v23  ;;  %v429_v27 = vadd.f32 %v623_v24, %v923_v17 }
 0x1e2   :  { %v625_v28 = vpop.f32.mrf.mxu0  ;;  %v631_v29 = vpop.f32.mrf.mxu1 }
 0x1e3   :  { %v503_v30 = vmax.f32 %v429_v27, 0.0  ;;  %v626_v31 = vadd.f32 %v625_v28, %v624_v25  ;;  %v632_v32 = vadd.f32 %v631_v29, %v630_v26 }
 0x1e4   :  { %v627_v33 = vpop.f32.mrf.mxu0  ;;  %v633_v34 = vpop.f32.mrf.mxu1 }
 0x1e5   :  { %519 = vst [vmem:[#allocation10 + $0x8] sm:$0xff] %v503_v30  ;;  %v434_v35 = vadd.f32 %v626_v31, %v923_v17  ;;  %v444_v36 = vadd.f32 %v632_v32, %v923_v17 }
 0x1e6   :  { %v628_v37 = vpop.f32.mrf.mxu0  ;;  %v634_v38 = vpop.f32.mrf.mxu1 }
 0x1e7   :  { %v504_v39 = vmax.f32 %v434_v35, 0.0  ;;  %v506_v40 = vmax.f32 %v444_v36, 0.0  ;;  %v629_v41 = vadd.f32 %v628_v37, %v627_v33  ;;  %v635_v42 = vadd.f32 %v634_v38, %v633_v34 }
 0x1e8   :  { %v636_v43 = vpop.f32.mrf.mxu1 }
 0x1e9   :  { %520 = vst [vmem:[#allocation10 + $0x10] sm:$0xff] %v504_v39  ;;  %522 = vst [vmem:[#allocation10 + $0x20] sm:$0xff] %v506_v40  ;;  %v439_v44 = vadd.f32 %v629_v41, %v923_v17  ;;  %v449_v45 = vadd.f32 %v635_v42, %v923_v17 }
 0x1ea   :  { %v637_v46 = vpop.f32.mrf.mxu1 }
 0x1eb   :  { %v505_v47 = vmax.f32 %v439_v44, 0.0  ;;  %v507_v48 = vmax.f32 %v449_v45, 0.0  ;;  %v638_v49 = vadd.f32 %v637_v46, %v636_v43 }
 0x1ec   :  { %v639_v50 = vpop.f32.mrf.mxu1 }
 0x1ed   :  { %521 = vst [vmem:[#allocation10 + $0x18] sm:$0xff] %v505_v47  ;;  %523 = vst [vmem:[#allocation10 + $0x28] sm:$0xff] %v507_v48  ;;  %v454_v51 = vadd.f32 %v638_v49, %v923_v17 }
 0x1ee   :  { %v640_v52 = vpop.f32.mrf.mxu1 }
 0x1ef   :  { %v508_v53 = vmax.f32 %v454_v51, 0.0  ;;  %v641_v54 = vadd.f32 %v640_v52, %v639_v50 }
 0x1f0   :  { %v642_v55 = vpop.f32.mrf.mxu1 }
 0x1f1   :  { %524 = vst [vmem:[#allocation10 + $0x30] sm:$0xff] %v508_v53  ;;  %v459_v56 = vadd.f32 %v641_v54, %v923_v17 }
 0x1f2   :  { %v643_v57 = vpop.f32.mrf.mxu1 }
 0x1f3   :  { %v509_v58 = vmax.f32 %v459_v56, 0.0  ;;  %v644_v59 = vadd.f32 %v643_v57, %v642_v55 }
 0x1f4   :  { %v645_v60 = vpop.f32.mrf.mxu1 }
 0x1f5   :  { %525 = vst [vmem:[#allocation10 + $0x38] sm:$0xff] %v509_v58  ;;  %v464_v61 = vadd.f32 %v644_v59, %v923_v17 }
 0x1f6   :  { %v646_v62 = vpop.f32.mrf.mxu1 }
 0x1f7   :  { %v510_v63 = vmax.f32 %v464_v61, 0.0  ;;  %v647_v0 = vadd.f32 %v646_v62, %v645_v60 }
 0x1f8   :  { %v648_v1 = vpop.f32.mrf.mxu1 }
 0x1f9   :  { %526 = vst [vmem:[#allocation10 + $0x40] sm:$0xff] %v510_v63  ;;  %v469_v2 = vadd.f32 %v647_v0, %v923_v17 }
 0x1fa   :  { %v649_v3 = vpop.f32.mrf.mxu1 }
 0x1fb   :  { %v511_v4 = vmax.f32 %v469_v2, 0.0  ;;  %v650_v5 = vadd.f32 %v649_v3, %v648_v1 }
 0x1fc   :  { %v651_v6 = vpop.f32.mrf.mxu1 }
 0x1fd   :  { %527 = vst [vmem:[#allocation10 + $0x48] sm:$0xff] %v511_v4  ;;  %v474_v7 = vadd.f32 %v650_v5, %v923_v17 }
 0x1fe   :  { %v652_v8 = vpop.f32.mrf.mxu1 }
 0x1ff   :  { %v512_v9 = vmax.f32 %v474_v7, 0.0  ;;  %v653_v10 = vadd.f32 %v652_v8, %v651_v6 }
 0x200   :  { %v654_v11 = vpop.f32.mrf.mxu1 }
 0x201   :  { %528 = vst [vmem:[#allocation10 + $0x50] sm:$0xff] %v512_v9  ;;  %v479_v12 = vadd.f32 %v653_v10, %v923_v17 }
 0x202   :  { %v655_v13 = vpop.f32.mrf.mxu1 }
 0x203   :  { %v513_v14 = vmax.f32 %v479_v12, 0.0  ;;  %v656_v15 = vadd.f32 %v655_v13, %v654_v11 }
 0x204   :  { %v657_v16 = vpop.f32.mrf.mxu1 }
 0x205   :  { %529 = vst [vmem:[#allocation10 + $0x58] sm:$0xff] %v513_v14  ;;  %v484_v18 = vadd.f32 %v656_v15, %v923_v17 }
 0x206   :  { %v658_v19 = vpop.f32.mrf.mxu1 }
 0x207   :  { %v514_v20 = vmax.f32 %v484_v18, 0.0  ;;  %v659_v21 = vadd.f32 %v658_v19, %v657_v16 }
 0x208   :  { %v660_v22 = vpop.f32.mrf.mxu1 }
 0x209   :  { %530 = vst [vmem:[#allocation10 + $0x60] sm:$0xff] %v514_v20  ;;  %v489_v23 = vadd.f32 %v659_v21, %v923_v17 }
 0x20a   :  { %v661_v24 = vpop.f32.mrf.mxu1 }
 0x20b   :  { %v515_v25 = vmax.f32 %v489_v23, 0.0  ;;  %v662_v26 = vadd.f32 %v661_v24, %v660_v22 }
 0x20c   :  { %v663_v27 = vpop.f32.mrf.mxu1 }
 0x20d   :  { %531 = vst [vmem:[#allocation10 + $0x68] sm:$0xff] %v515_v25  ;;  %v494_v28 = vadd.f32 %v662_v26, %v923_v17 }
 0x20e   :  { %v664_v29 = vpop.f32.mrf.mxu1 }
 0x20f   :  { %v516_v30 = vmax.f32 %v494_v28, 0.0  ;;  %v665_v31 = vadd.f32 %v664_v29, %v663_v27 }
 0x211   :  { %532 = vst [vmem:[#allocation10 + $0x70] sm:$0xff] %v516_v30  ;;  %v499_v32 = vadd.f32 %v665_v31, %v923_v17 }
 0x213   :  { %v517_v33 = vmax.f32 %v499_v32, 0.0 }
 0x215   :  { %533 = vst [vmem:[#allocation10 + $0x78] sm:$0xff] %v517_v33 }
 0x216   :  { %846 = shalt.err (!%p843_p10)
}
 0x217   :  { %545 = dma.vmem_to_hbm [thread:$0]  %s540_s15, 2048, %s952_s5, [#allocation4], %s868_s1, %s868_s1, %s869_s8  }
 0x218   :  { %861 = dma.done.wait [#allocation4], 2048  }
 0x219   :  { %862 = vsyncadd [#allocation4], 4294965248 }
 0x21a   :  { %549 = vsyncpa [#allocation3], 1 }
 0x21b   :  { %550 = vsyncpa [#allocation6], 1 }
 0x21c   :  { %551 = vsyncpa [#allocation9], 1 }
 0x21d   :  { %552 = vsyncpa [#allocation4], 1 }

</bundles_post_ra>
